<compile_context>
chip_gen: v6e
topology: v6e:2x2x1
jax: 0.10.0
libtpu: 0.0.40
codegen_flags: <defaults>
</compile_context>

<pallas_src>
import jax
import jax.numpy as jnp
from jax import lax
from jax.experimental import pallas as pl
from jax.experimental.pallas import tpu as pltpu


LANE = 128  # TPU lane width; minor dims are zero-padded to multiples of this.


def _round_up(n, m):
    return ((n + m - 1) // m) * m


def clip_sim_kernel(pooled_ref, w_fused_ref, text_t_ref, out_ref):
    # pooled_ref : [tb, Dp_pad]   bf16  patch-sum-pooled image (1/P folded into w)
    # w_fused_ref: [Dp_pad, E_pad] bf16 (1/P) * (w_patch @ w_proj), zero-padded
    # text_t_ref : [E_pad, T_pad]  bf16 (100 * text/||text||)^T, zero-padded
    # out_ref    : [tb, T_pad]     f32  similarity logits (lane-dense tile)

    # --- synthetic encode_image: single fused [tb,Dp]x[Dp,E] MXU pass --------
    img = jnp.dot(pooled_ref[...], w_fused_ref[...],
                  preferred_element_type=jnp.float32)              # [tb, E_pad] f32

    # --- image_features / ||image_features||  (f32 rsqrt on the EUP path) ----
    # (no epsilon, matching the PyTorch divide; an all-zero image feature
    #  yields inf/NaN in both implementations)
    inv_norm = lax.rsqrt(jnp.sum(img * img, axis=-1, keepdims=True))
    img_n = (img * inv_norm).astype(jnp.bfloat16)                  # [tb, E_pad]

    # --- similarity = 100 * image_norm @ text_norm.T --------------------------
    # (100x scale, transpose and lane padding live in the precomputed text_t)
    out_ref[...] = jnp.dot(img_n, text_t_ref[...],
                           preferred_element_type=jnp.float32)     # [tb, T_pad]


def prepare_clip_constants(w_patch, w_proj, text_features, num_patches):
    """One-time setup (analogous to registered buffers in the PyTorch module)."""
    Dp, _ = w_patch.shape
    E = w_proj.shape[1]
    T = text_features.shape[0]
    Dp_pad = _round_up(Dp, LANE)
    E_pad = _round_up(E, LANE)
    T_pad = _round_up(T, LANE)

    # Fused encoder weight with the mean-pool 1/P factor folded in, zero-padded
    # to lane multiples on both dims, stored as bf16 (MXU-native input).
    w_fused = jnp.dot(w_patch, w_proj) / float(num_patches)               # [Dp, E] f32
    w_fused = jnp.pad(w_fused, ((0, Dp_pad - Dp), (0, E_pad - E)))
    w_fused = w_fused.astype(jnp.bfloat16)                                # [Dp_pad, E_pad]

    # Pre-normalized, pre-scaled (100x), pre-transposed, lane-padded text
    # features.  Padded rows (E) are zero so they contribute nothing to the
    # contraction; padded columns (T) produce discarded logits.
    txt_n = text_features / jnp.linalg.norm(text_features, axis=-1, keepdims=True)
    text_t = (100.0 * txt_n).T                                            # [E, T] f32
    text_t = jnp.pad(text_t, ((0, E_pad - E), (0, T_pad - T)))
    text_t = text_t.astype(jnp.bfloat16)                                  # [E_pad, T_pad]
    return w_fused, text_t


def clip_sim_forward(x, w_fused, text_t, num_text, patch=8, block_b=256):
    B, C, H, W = x.shape
    hp, wp = H // patch, W // patch
    Dp = C * patch * patch
    Dp_pad, E_pad = w_fused.shape
    T_pad = text_t.shape[1]

    # Patch-sum pooling in the wrapper (the 1/P mean factor is folded into
    # w_fused).  The sum commutes with the patch permutation, so no [B, P, Dp]
    # patches tensor is ever materialized or round-tripped through HBM.
    pooled = x.reshape(B, C, hp, patch, wp, patch).sum(axis=(2, 4)).reshape(B, Dp)
    pooled = jnp.pad(pooled, ((0, 0), (0, Dp_pad - Dp))).astype(jnp.bfloat16)

    # Batch tiling: for large batches use MXU-row-filling tiles (block_b=256 on
    # v6e/v7x; pass block_b=128 for v5e) and pad the batch to a multiple of tb
    # so a non-multiple B never collapses into one giant block.  grid >= 2 lets
    # dimension_semantics=("parallel",) shard steps across v7x's two cores.
    tb = block_b if B > block_b else B
    B_pad = pl.cdiv(B, tb) * tb
    if B_pad > B:
        pooled = jnp.pad(pooled, ((0, B_pad - B), (0, 0)))
    grid = (B_pad // tb,)

    # Explicit scoped-VMEM budget: per-step working set with headroom
    # (double-buffered activations/output + both constant buffers), clamped to
    # v7x's 64 MiB physical VMEM.
    work = (2 * tb * Dp_pad * 2          # pooled tiles (bf16, double-buffered)
            + 2 * Dp_pad * E_pad * 2     # fused weight (bf16)
            + 2 * E_pad * T_pad * 2      # text constant (bf16)
            + 2 * tb * T_pad * 4)        # output tiles (f32, double-buffered)
    vmem_limit = int(min(64 * 2 ** 20, max(32 * 2 ** 20, 2 * work)))

    def make_call(single_buffer_consts):
        const_kwargs = (dict(pipeline_mode=pl.Buffered(buffer_count=1))
                        if single_buffer_consts else {})
        grid_spec = pltpu.PrefetchScalarGridSpec(
            num_scalar_prefetch=0,
            grid=grid,
            in_specs=[
                pl.BlockSpec((tb, Dp_pad), lambda i: (i, 0)),
                pl.BlockSpec((Dp_pad, E_pad), lambda i: (0, 0), **const_kwargs),
                pl.BlockSpec((E_pad, T_pad), lambda i: (0, 0), **const_kwargs),
            ],
            out_specs=pl.BlockSpec((tb, T_pad), lambda i: (i, 0)),
        )
        return pl.pallas_call(
            clip_sim_kernel,
            out_shape=jax.ShapeDtypeStruct((B_pad, T_pad), jnp.float32),
            grid_spec=grid_spec,
            compiler_params=pltpu.CompilerParams(
                dimension_semantics=("parallel",),
                vmem_limit_bytes=vmem_limit),
        )

    try:
        # Constants are never re-fetched (constant index_map) -> single-buffer
        # them to reclaim VMEM (matters on v7x's 64 MiB).
        sim_padded = jax.block_until_ready(make_call(True)(pooled, w_fused, text_t))
    except Exception:
        # pl.Buffered(1) single-buffering not supported by this JAX/Mosaic
        # version; fall back to default double-buffered constants.
        sim_padded = make_call(False)(pooled, w_fused, text_t)

    # Drop batch / text lane padding; .squeeze() as in the PyTorch forward.
    return jnp.squeeze(sim_padded[:B, :num_text])


if __name__ == "__main__":
    # Small shapes consistent with the module:
    #   images : [B=2, C=3, H=16, W=16]  (NCHW, like CLIP preprocess output)
    #   text   : [T=2, E=32]             (two prompts: 'non toxic' / 'toxic')
    B, C, H, W = 2, 3, 16, 16
    patch = 8
    width = 64           # synthetic visual width
    embed_dim = 32       # shared image/text embedding dim
    num_text = 2
    patch_dim = C * patch * patch
    num_patches = (H // patch) * (W // patch)

    key = jax.random.PRNGKey(0)
    k_x, k_wp, k_pr, k_tf = jax.random.split(key, 4)

    x = jax.random.normal(k_x, (B, C, H, W), dtype=jnp.float32)
    w_patch = 0.02 * jax.random.normal(k_wp, (patch_dim, width), dtype=jnp.float32)
    w_proj = 0.02 * jax.random.normal(k_pr, (width, embed_dim), dtype=jnp.float32)
    text_features = jax.random.normal(k_tf, (num_text, embed_dim), dtype=jnp.float32)

    # One-time constant preparation (outside the per-call hot path).
    w_fused, text_t = prepare_clip_constants(w_patch, w_proj, text_features,
                                             num_patches)

    sim = clip_sim_forward(x, w_fused, text_t, num_text, patch=patch)
    sim = jax.block_until_ready(sim)

    # --- Reference 1: dtype-matched (same prepared bf16 constants, same op
    # order) — validates the Pallas kernel itself.
    hp, wp_ = H // patch, W // patch
    pooled = x.reshape(B, C, hp, patch, wp_, patch).sum(axis=(2, 4)).reshape(B, patch_dim)
    pooled_p = jnp.pad(pooled, ((0, 0), (0, w_fused.shape[0] - patch_dim))).astype(jnp.bfloat16)
    img = jnp.dot(pooled_p, w_fused, preferred_element_type=jnp.float32)
    img_n = (img * lax.rsqrt(jnp.sum(img * img, axis=-1, keepdims=True))).astype(jnp.bfloat16)
    ref_bf = jnp.squeeze(
        jnp.dot(img_n, text_t, preferred_element_type=jnp.float32)[:, :num_text])
    assert sim.shape == ref_bf.shape
    assert jnp.allclose(sim, ref_bf, atol=5e-2, rtol=1e-3)

    # --- Reference 2: original (unfused, full-f32) formulation — validates the
    # module semantics; tolerance covers bf16 storage of the constants on
    # 100x-scaled logits.
    img_f = (pooled / float(num_patches)) @ w_patch @ w_proj
    img_fn = img_f / jnp.linalg.norm(img_f, axis=-1, keepdims=True)
    txt_fn = text_features / jnp.linalg.norm(text_features, axis=-1, keepdims=True)
    ref_f32 = jnp.squeeze(100.0 * img_fn @ txt_fn.T)
    assert sim.shape == ref_f32.shape
    assert jnp.allclose(sim, ref_f32, atol=1.5, rtol=0.0)

    print("KERNEL_OK")
</pallas_src>

<mosaic_0001>
module attributes {stable_mosaic.version = 11 : i64} {
  func.func @clip_sim_kernel(%arg0: i32, %arg1: memref<2x256xbf16, #tpu.memory_space<vmem>>, %arg2: memref<256x128xbf16, #tpu.memory_space<vmem>>, %arg3: memref<128x128xbf16, #tpu.memory_space<vmem>>, %arg4: memref<2x128xf32, #tpu.memory_space<vmem>>) attributes {dimension_semantics = [#tpu.dimension_semantics<parallel>], iteration_bounds = array<i64: 1>, scalar_prefetch = 0 : i64, scratch_operands = 0 : i64, tpu.core_type = #tpu.core_type<tc>, window_params = [{transform_indices = @transform_0, window_bounds = array<i64: 2, 256>}, {pipeline_mode = #tpu.pipeline_mode<synchronous>, transform_indices = @transform_1, window_bounds = array<i64: 256, 128>}, {pipeline_mode = #tpu.pipeline_mode<synchronous>, transform_indices = @transform_2, window_bounds = array<i64: 128, 128>}, {transform_indices = @transform_3, window_bounds = array<i64: 2, 128>}]} {
    %c0 = arith.constant 0 : index
    %c0_0 = arith.constant 0 : index
    %0 = vector.load %arg1[%c0, %c0_0] : memref<2x256xbf16, #tpu.memory_space<vmem>>, vector<2x256xbf16>
    %c0_1 = arith.constant 0 : index
    %c0_2 = arith.constant 0 : index
    %1 = vector.load %arg2[%c0_1, %c0_2] : memref<256x128xbf16, #tpu.memory_space<vmem>>, vector<256x128xbf16>
    %cst = arith.constant dense<0.000000e+00> : vector<2x128xf32>
    %2 = tpu.matmul %0, %1, %cst {dimension_numbers = #tpu.dot_dimension_numbers<[1], [0], [0], [1], [0, 0, 1, 1], [], []>} : vector<2x256xbf16>, vector<256x128xbf16>, vector<2x128xf32> -> vector<2x128xf32>
    %3 = arith.mulf %2, %2 : vector<2x128xf32>
    %cst_3 = arith.constant dense<0.000000e+00> : vector<2xf32>
    %4 = vector.multi_reduction <add>, %3, %cst_3 [1] : vector<2x128xf32> to vector<2xf32>
    %5 = vector.shape_cast %4 : vector<2xf32> to vector<2x1xf32>
    %6 = math.rsqrt %5 : vector<2x1xf32>
    %7 = vector.broadcast %6 : vector<2x1xf32> to vector<2x128xf32>
    %8 = arith.mulf %2, %7 : vector<2x128xf32>
    %9 = arith.truncf %8 : vector<2x128xf32> to vector<2x128xbf16>
    %c0_4 = arith.constant 0 : index
    %c0_5 = arith.constant 0 : index
    %10 = vector.load %arg3[%c0_4, %c0_5] : memref<128x128xbf16, #tpu.memory_space<vmem>>, vector<128x128xbf16>
    %cst_6 = arith.constant dense<0.000000e+00> : vector<2x128xf32>
    %11 = tpu.matmul %9, %10, %cst_6 {dimension_numbers = #tpu.dot_dimension_numbers<[1], [0], [0], [1], [0, 0, 1, 1], [], []>} : vector<2x128xbf16>, vector<128x128xbf16>, vector<2x128xf32> -> vector<2x128xf32>
    %c0_7 = arith.constant 0 : index
    %c0_8 = arith.constant 0 : index
    %12 = vector.load %arg4[%c0_7, %c0_8] : memref<2x128xf32, #tpu.memory_space<vmem>>, vector<2x128xf32>
    tpu.vector_store %arg4[%c0_7, %c0_8], %11 {strides = array<i32>} : memref<2x128xf32, #tpu.memory_space<vmem>>, vector<2x128xf32>,
    return
  }
  func.func @transform_0(%arg0: i32) -> (i32, i32) {
    %c0_i32 = arith.constant 0 : i32
    %c0_i32_0 = arith.constant 0 : i32
    return %arg0, %c0_i32 : i32, i32
  }
  func.func @transform_1(%arg0: i32) -> (i32, i32) {
    %c0_i32 = arith.constant 0 : i32
    %c0_i32_0 = arith.constant 0 : i32
    %c0_i32_1 = arith.constant 0 : i32
    return %c0_i32, %c0_i32_0 : i32, i32
  }
  func.func @transform_2(%arg0: i32) -> (i32, i32) {
    %c0_i32 = arith.constant 0 : i32
    %c0_i32_0 = arith.constant 0 : i32
    %c0_i32_1 = arith.constant 0 : i32
    return %c0_i32, %c0_i32_0 : i32, i32
  }
  func.func @transform_3(%arg0: i32) -> (i32, i32) {
    %c0_i32 = arith.constant 0 : i32
    %c0_i32_0 = arith.constant 0 : i32
    return %arg0, %c0_i32 : i32, i32
  }
}

module attributes {stable_mosaic.version = 11 : i64} {
  func.func @clip_sim_kernel(%arg0: i32, %arg1: memref<2x256xbf16, #tpu.memory_space<vmem>>, %arg2: memref<256x128xbf16, #tpu.memory_space<vmem>>, %arg3: memref<128x128xbf16, #tpu.memory_space<vmem>>, %arg4: memref<2x128xf32, #tpu.memory_space<vmem>>) attributes {dimension_semantics = [#tpu.dimension_semantics<parallel>], iteration_bounds = array<i64: 1>, scalar_prefetch = 0 : i64, scratch_operands = 0 : i64, tpu.core_type = #tpu.core_type<tc>, window_params = [{transform_indices = @transform_0, window_bounds = array<i64: 2, 256>}, {pipeline_mode = #tpu.pipeline_mode<synchronous>, transform_indices = @transform_1, window_bounds = array<i64: 256, 128>}, {pipeline_mode = #tpu.pipeline_mode<synchronous>, transform_indices = @transform_2, window_bounds = array<i64: 128, 128>}, {transform_indices = @transform_3, window_bounds = array<i64: 2, 128>}]} {
    %c0 = arith.constant 0 : index
    %c0_0 = arith.constant 0 : index
    %0 = vector.load %arg1[%c0, %c0_0] : memref<2x256xbf16, #tpu.memory_space<vmem>>, vector<2x256xbf16>
    %c0_1 = arith.constant 0 : index
    %c0_2 = arith.constant 0 : index
    %1 = vector.load %arg2[%c0_1, %c0_2] : memref<256x128xbf16, #tpu.memory_space<vmem>>, vector<256x128xbf16>
    %cst = arith.constant dense<0.000000e+00> : vector<2x128xf32>
    %2 = tpu.matmul %0, %1, %cst {dimension_numbers = #tpu.dot_dimension_numbers<[1], [0], [0], [1], [0, 0, 1, 1], [], []>} : vector<2x256xbf16>, vector<256x128xbf16>, vector<2x128xf32> -> vector<2x128xf32>
    %3 = arith.mulf %2, %2 : vector<2x128xf32>
    %cst_3 = arith.constant dense<0.000000e+00> : vector<2xf32>
    %4 = vector.multi_reduction <add>, %3, %cst_3 [1] : vector<2x128xf32> to vector<2xf32>
    %5 = vector.shape_cast %4 : vector<2xf32> to vector<2x1xf32>
    %6 = math.rsqrt %5 : vector<2x1xf32>
    %7 = vector.broadcast %6 : vector<2x1xf32> to vector<2x128xf32>
    %8 = arith.mulf %2, %7 : vector<2x128xf32>
    %9 = arith.truncf %8 : vector<2x128xf32> to vector<2x128xbf16>
    %c0_4 = arith.constant 0 : index
    %c0_5 = arith.constant 0 : index
    %10 = vector.load %arg3[%c0_4, %c0_5] : memref<128x128xbf16, #tpu.memory_space<vmem>>, vector<128x128xbf16>
    %cst_6 = arith.constant dense<0.000000e+00> : vector<2x128xf32>
    %11 = tpu.matmul %9, %10, %cst_6 {dimension_numbers = #tpu.dot_dimension_numbers<[1], [0], [0], [1], [0, 0, 1, 1], [], []>} : vector<2x128xbf16>, vector<128x128xbf16>, vector<2x128xf32> -> vector<2x128xf32>
    %c0_7 = arith.constant 0 : index
    %c0_8 = arith.constant 0 : index
    %12 = vector.load %arg4[%c0_7, %c0_8] : memref<2x128xf32, #tpu.memory_space<vmem>>, vector<2x128xf32>
    tpu.vector_store %arg4[%c0_7, %c0_8], %11 {strides = array<i32>} : memref<2x128xf32, #tpu.memory_space<vmem>>, vector<2x128xf32>,
    return
  }
  func.func @transform_0(%arg0: i32) -> (i32, i32) {
    %c0_i32 = arith.constant 0 : i32
    %c0_i32_0 = arith.constant 0 : i32
    return %arg0, %c0_i32 : i32, i32
  }
  func.func @transform_1(%arg0: i32) -> (i32, i32) {
    %c0_i32 = arith.constant 0 : i32
    %c0_i32_0 = arith.constant 0 : i32
    %c0_i32_1 = arith.constant 0 : i32
    return %c0_i32, %c0_i32_0 : i32, i32
  }
  func.func @transform_2(%arg0: i32) -> (i32, i32) {
    %c0_i32 = arith.constant 0 : i32
    %c0_i32_0 = arith.constant 0 : i32
    %c0_i32_1 = arith.constant 0 : i32
    return %c0_i32, %c0_i32_0 : i32, i32
  }
  func.func @transform_3(%arg0: i32) -> (i32, i32) {
    %c0_i32 = arith.constant 0 : i32
    %c0_i32_0 = arith.constant 0 : i32
    return %arg0, %c0_i32 : i32, i32
  }
}

</mosaic_0001>

<bundles_post_ra>
// kernel: tpu_custom_call.1
= control target key start
LH: loop header
LB: loop body
LE: loop exit
PB: predicated region body
PF: predicated region fallthrough
CT: control target
= control target key end

     0   :  { %8 = vsyncpa [#allocation3], 0  ;;  %s616_s0 = inlined_call_operand.hbm [shape: bf16[2,256], index: 0, kind: input, shape index: {}]   ;;  %s617_s1 = inlined_call_operand.hbm [shape: bf16[256,128], index: 1, kind: input, shape index: {}]   ;;  %s618_s2 = inlined_call_operand.hbm [shape: bf16[128,128], index: 2, kind: input, shape index: {}]   ;;  %s619_s3 = inlined_call_operand.hbm [shape: f32[2,128], index: 3, kind: output, shape index: {}]  }
   0x1   :  { %9 = vsyncpa [#allocation6], 0 }
   0x2   :  { %10 = vsyncpa [#allocation4], 0  ;;  %s575_s12 = smov [#allocation5]  }
   0x3   :  { %s26_s13 = sshll.u32 %s575_s12, 4  ;;  %s27_s13 = int_to_ptr.vmem [resolvable:$true] %s26_s13 }
   0x4   :  { %s497_s14 = scalar_lea.vmem %s27_s13, 2048  ;;  %p502_p1 = scmp.lt.s32.totalorder %s27_s13, %s27_s13 }
   0x5   :  { %p498_p0 = scmp.ne.s32.totalorder %s27_s13, %s497_s14  ;;  %p503_p2 = scmp.lt.s32.totalorder %s497_s14, %s497_s14 }
   0x7   :  { %p504_p3 = por %p503_p2, %p502_p1 }
   0x9   :  { %p505_p4 = pnand %p504_p3, %p498_p0 }
   0xb   :  { %508 = shalt.err (!%p505_p4)
}
   0xc   :  { %s576_s15 = smov 64   ;;  %s577_s16 = smov 4  }
   0xd   :  { %32 = dma.hbm_to_vmem [thread:$0]  %s617_s1, 2048, %s27_s13, [#allocation6], %s576_s15, %s576_s15, %s577_s16  }
   0xe   :  { %s578_s19 = smov [#allocation2]   ;;  %s579_s21 = smov [#allocation7]  }
   0xf   :  { %s17_s20 = sshll.u32 %s578_s19, 4  ;;  %s38_s22 = sshll.u32 %s579_s21, 4  ;;  %s18_s20 = int_to_ptr.vmem [resolvable:$true] %s17_s20  ;;  %s39_s22 = int_to_ptr.vmem [resolvable:$true] %s38_s22 }
  0x10   :  { %s517_s23 = scalar_lea.vmem %s18_s20, 32  ;;  %p522_p6 = scmp.lt.s32.totalorder %s18_s20, %s18_s20 }
  0x11   :  { %p518_p5 = scmp.ne.s32.totalorder %s18_s20, %s517_s23  ;;  %p523_p7 = scmp.lt.s32.totalorder %s517_s23, %s517_s23 }
  0x13   :  { %p524_p8 = por %p523_p7, %p522_p6 }
  0x15   :  { %p525_p9 = pnand %p524_p8, %p518_p5 }
  0x17   :  { %528 = shalt.err (!%p525_p9)
}
  0x18   :  { %20 = dma.hbm_to_vmem [thread:$0]  %s616_s0, 32, %s18_s20, [#allocation3]  }
  0x19   :  { %s537_s26 = scalar_lea.vmem %s39_s22, 1024  ;;  %p542_p11 = scmp.lt.s32.totalorder %s39_s22, %s39_s22 }
  0x1a   :  { %p538_p10 = scmp.ne.s32.totalorder %s39_s22, %s537_s26  ;;  %p543_p12 = scmp.lt.s32.totalorder %s537_s26, %s537_s26 }
  0x1c   :  { %p544_p13 = por %p543_p12, %p542_p11 }
  0x1e   :  { %p545_p0 = pnand %p544_p13, %p538_p10 }
  0x20   :  { %548 = shalt.err (!%p545_p0)
}
  0x21   :  { %44 = dma.hbm_to_vmem [thread:$0]  %s618_s2, 1024, %s39_s22, [#allocation6], %s576_s15, %s576_s15, %s577_s16  }
  0x22   :  { %569 = dma.done.wait [#allocation3], 32  }
  0x23   :  { %570 = vsyncadd [#allocation3], 4294967264 }
  0x24   :  { %571 = dma.done.wait [#allocation6], 3072  }
  0x25   :  { %572 = vsyncadd [#allocation6], 4294964224  ;;  %v463_v0 = vld [vmem:[#allocation5 + $0x78] sm:$0xff]   ;;  %v465_v2 = vld [vmem:[#allocation5 + $0x70] sm:$0xff]   ;;  %v580_v6 = vmov 1966171168   ;;  %v100_v8 = vlaneseq }
  0x26   :  { %v464_v1 = vld [vmem:[#allocation5 + $0x38] sm:$0xff]   ;;  %403 = vmatprep.subr.bf16.mxu0 %v463_v0  ;;  %v466_v3 = vld [vmem:[#allocation5 + $0x30] sm:$0xff]   ;;  %v467_v4 = vld [vmem:[#allocation5 + $0x68] sm:$0xff]   ;;  %v98_v7 = vunpack.c.l.s4 %v580_v6  ;;  %v581_v27 = vmov 0.0   ;;  %vm250_vm0 = vcmask 1041408   ;;  %vm582_vm1 = vmmov 0  }
  0x27   :  { %404 = vmatpush3.bf16.msra.mxu0 %v464_v1  ;;  %v468_v5 = vld [vmem:[#allocation5 + $0x28] sm:$0xff]   ;;  %v469_v9 = vld [vmem:[#allocation5 + $0x60] sm:$0xff]   ;;  %v101_v12 = vshrl.u32 %v100_v8, 7  ;;  %v471_v13 = vld [vmem:[#allocation5 + $0x58] sm:$0xff]   ;;  %434 = vmatprep.subr.bf16.mxu1 %v581_v27  ;;  %s583_s0 = smov [#allocation8]  }
  0x28   :  { %405 = vmatprep.subr.bf16.mxu0 %v465_v2  ;;  %v470_v10 = vld [vmem:[#allocation5 + $0x20] sm:$0xff]   ;;  %v99_v11 = vunpack.c.0.s8 %v98_v7  ;;  %v472_v14 = vld [vmem:[#allocation5 + $0x18] sm:$0xff]   ;;  %v473_v15 = vld [vmem:[#allocation5 + $0x50] sm:$0xff]   ;;  %450 = vmatprep.mubr.msk.bf16.mxu1 %vm582_vm1, %v581_v27  ;;  %s368_s2 = sshll.u32 %s583_s0, 4  ;;  %s369_s2 = int_to_ptr.vmem [resolvable:$true] %s368_s2 }
  0x29   :  { %v378_v17 = vld.sshfl [vmem:[#allocation2] sm:$0x11 pattern:$0x75316420]  ;;  %v474_v18 = vld [vmem:[#allocation5 + $0x10] sm:$0xff]   ;;  %v475_v20 = vld [vmem:[#allocation5 + $0x48] sm:$0xff]   ;;  %p554_p2 = scmp.lt.s32.totalorder %s369_s2, %s369_s2 }
  0x2a   :  { %v102_v16 = vsub.s32 %v99_v11, %v101_v12  ;;  %v96_v19 = vcombine.high %v378_v17, %v378_v17  ;;  %v476_v22 = vld [vmem:[#allocation5 + $0x8] sm:$0xff]   ;;  %v477_v23 = vld [vmem:[#allocation5 + $0x40] sm:$0xff]   ;;  %v479_v26 = vld [vmem:[#allocation7 + $0x38] sm:$0xff]   ;;  %s549_s28 = scalar_lea.vmem %s369_s2, 32 }
  0x2b   :  { %406 = vmatpush3.bf16.msra.mxu0 %v466_v3  ;;  %v478_v24 = vld [vmem:[#allocation5] sm:$0xff]   ;;  %435 = vmatpush3.bf16.msra.mxu1 %v479_v26  ;;  %v480_v28 = vld [vmem:[#allocation7 + $0x30] sm:$0xff]   ;;  %v481_v29 = vld [vmem:[#allocation7 + $0x28] sm:$0xff]   ;;  %p550_p1 = scmp.ne.s32.totalorder %s369_s2, %s549_s28  ;;  %p555_p3 = scmp.lt.s32.totalorder %s549_s28, %s549_s28 }
  0x2c   :  { %407 = vmatprep.subr.bf16.mxu0 %v467_v4  ;;  %v110_v21 = vrot.slane %v96_v19, %v102_v16  ;;  %v103_v25 = vrot.slane %v378_v17, %v102_v16  ;;  %436 = vmatprep.subr.bf16.mxu1 %v581_v27  ;;  %v482_v37 = vld [vmem:[#allocation7 + $0x20] sm:$0xff]   ;;  %v483_v38 = vld [vmem:[#allocation7 + $0x18] sm:$0xff]   ;;  %v484_v39 = vld [vmem:[#allocation7 + $0x10] sm:$0xff]  }
  0x2d   :  { %v485_v40 = vld [vmem:[#allocation7 + $0x8] sm:$0xff]   ;;  %v486_v41 = vld [vmem:[#allocation7] sm:$0xff]   ;;  %p556_p4 = por %p555_p3, %p554_p2 }
  0x2e   :  { %241 = vmatprep.mubr.bf16.mxu0 %v110_v21 }
  0x2f   :  { %408 = vmatpush3.bf16.msra.mxu0 %v468_v5  ;;  %437 = vmatpush3.bf16.msra.mxu1 %v480_v28  ;;  %p557_p5 = pnand %p556_p4, %p550_p1 }
  0x30   :  { %409 = vmatprep.subr.bf16.mxu0 %v469_v9  ;;  %438 = vmatprep.subr.bf16.mxu1 %v581_v27 }
  0x33   :  { %410 = vmatpush3.bf16.msra.mxu0 %v470_v10  ;;  %439 = vmatpush3.bf16.msra.mxu1 %v481_v29 }
  0x34   :  { %411 = vmatprep.subr.bf16.mxu0 %v471_v13  ;;  %440 = vmatprep.subr.bf16.mxu1 %v581_v27 }
  0x37   :  { %412 = vmatpush3.bf16.msra.mxu0 %v472_v14  ;;  %441 = vmatpush3.bf16.msra.mxu1 %v482_v37 }
  0x38   :  { %413 = vmatprep.subr.bf16.mxu0 %v473_v15  ;;  %442 = vmatprep.subr.bf16.mxu1 %v581_v27 }
  0x3b   :  { %414 = vmatpush3.bf16.msra.mxu0 %v474_v18  ;;  %443 = vmatpush3.bf16.msra.mxu1 %v483_v38 }
  0x3c   :  { %415 = vmatprep.subr.bf16.mxu0 %v475_v20  ;;  %444 = vmatprep.subr.bf16.mxu1 %v581_v27 }
  0x3f   :  { %416 = vmatpush3.bf16.msra.mxu0 %v476_v22  ;;  %445 = vmatpush3.bf16.msra.mxu1 %v484_v39 }
  0x40   :  { %417 = vmatprep.subr.bf16.mxu0 %v477_v23  ;;  %446 = vmatprep.subr.bf16.mxu1 %v581_v27 }
  0x43   :  { %418 = vmatpush3.bf16.msra.mxu0 %v478_v24  ;;  %447 = vmatpush3.bf16.msra.mxu1 %v485_v40 }
  0x44   :  { %448 = vmatprep.subr.bf16.mxu1 %v581_v27 }
  0x46   :  { %242 = vmatmul.mubr.bf16.vlgmr.msra.gmra.mxu0 %v103_v25 }
  0x47   :  { %449 = vmatpush3.bf16.msra.mxu1 %v486_v41 }
 0x106   :  { %v419_v30 = vpop.f32.mrf.mxu0 }
 0x108   :  { %v420_v31 = vpop.f32.mrf.mxu0 }
 0x109   :  { %v421_v32 = vadd.f32 %v420_v31, %v419_v30 }
 0x10a   :  { %v422_v33 = vpop.f32.mrf.mxu0 }
 0x10b   :  { %v249_v34 = vmul.f32 %v421_v32, %v421_v32 }
 0x10c   :  { %v423_v35 = vpop.f32.mrf.mxu0 }
 0x10d   :  { %v251_v36 = vsel %vm250_vm0, %v249_v34, 0.0 }
 0x10e   :  { %252 = vadd.xlane.f32.xlu0 %v251_v36 }
 0x197   :  { %v253_v42 = vpop.xlane.xlu0 %252 }
 0x198   :  { %487 = vrsqrt.f32 %v253_v42 }
 0x1a5   :  { %v488_v43 = vpop.eup %487 }
 0x1a6   :  { %v255_v44 = vmul.f32 %v488_v43, %v421_v32 }
 0x1a8   :  { %v256_v45 = vpack.c.bf16 %v255_v44, %v255_v44 }
 0x1aa   :  { %451 = vmatmul.mubr.bf16.vlgmr.msra.gmra.mxu1 %v256_v45 }
 0x26a   :  { %v355_v46 = vpop.f32.mrf.mxu1 }
 0x26b   :  { %361 = vst [vmem:[#allocation8] sm:$0x3] %v355_v46 }
 0x26c   :  { %v452_v47 = vpop.f32.mrf.mxu1 }
 0x26d   :  { %560 = shalt.err (!%p557_p5)
}
 0x26e   :  { %371 = dma.vmem_to_hbm [thread:$0]  %s369_s2, 32, %s619_s3, [#allocation4]   ;;  %v358_v48 = vpop.f32.mrf.mxu1 }
 0x270   :  { %v453_v49 = vpop.f32.mrf.mxu1 }
 0x271   :  { %573 = dma.done.wait [#allocation4], 32  }
 0x272   :  { %574 = vsyncadd [#allocation4], 4294967264 }
 0x273   :  { %375 = vsyncpa [#allocation3], 1 }
 0x274   :  { %376 = vsyncpa [#allocation6], 1 }
 0x275   :  { %377 = vsyncpa [#allocation4], 1 }

// kernel: tpu_custom_call.1
= control target key start
LH: loop header
LB: loop body
LE: loop exit
PB: predicated region body
PF: predicated region fallthrough
CT: control target
= control target key end

     0   :  { %8 = vsyncpa [#allocation3], 0  ;;  %s616_s0 = inlined_call_operand.hbm [shape: bf16[2,256], index: 0, kind: input, shape index: {}]   ;;  %s617_s1 = inlined_call_operand.hbm [shape: bf16[256,128], index: 1, kind: input, shape index: {}]   ;;  %s618_s2 = inlined_call_operand.hbm [shape: bf16[128,128], index: 2, kind: input, shape index: {}]   ;;  %s619_s3 = inlined_call_operand.hbm [shape: f32[2,128], index: 3, kind: output, shape index: {}]  }
   0x1   :  { %9 = vsyncpa [#allocation6], 0 }
   0x2   :  { %10 = vsyncpa [#allocation4], 0  ;;  %s575_s12 = smov [#allocation5]  }
   0x3   :  { %s26_s13 = sshll.u32 %s575_s12, 4  ;;  %s27_s13 = int_to_ptr.vmem [resolvable:$true] %s26_s13 }
   0x4   :  { %s497_s14 = scalar_lea.vmem %s27_s13, 2048  ;;  %p502_p1 = scmp.lt.s32.totalorder %s27_s13, %s27_s13 }
   0x5   :  { %p498_p0 = scmp.ne.s32.totalorder %s27_s13, %s497_s14  ;;  %p503_p2 = scmp.lt.s32.totalorder %s497_s14, %s497_s14 }
   0x7   :  { %p504_p3 = por %p503_p2, %p502_p1 }
   0x9   :  { %p505_p4 = pnand %p504_p3, %p498_p0 }
   0xb   :  { %508 = shalt.err (!%p505_p4)
}
   0xc   :  { %s576_s15 = smov 64   ;;  %s577_s16 = smov 4  }
   0xd   :  { %32 = dma.hbm_to_vmem [thread:$0]  %s617_s1, 2048, %s27_s13, [#allocation6], %s576_s15, %s576_s15, %s577_s16  }
   0xe   :  { %s578_s19 = smov [#allocation2]   ;;  %s579_s21 = smov [#allocation7]  }
   0xf   :  { %s17_s20 = sshll.u32 %s578_s19, 4  ;;  %s38_s22 = sshll.u32 %s579_s21, 4  ;;  %s18_s20 = int_to_ptr.vmem [resolvable:$true] %s17_s20  ;;  %s39_s22 = int_to_ptr.vmem [resolvable:$true] %s38_s22 }
  0x10   :  { %s517_s23 = scalar_lea.vmem %s18_s20, 32  ;;  %p522_p6 = scmp.lt.s32.totalorder %s18_s20, %s18_s20 }
  0x11   :  { %p518_p5 = scmp.ne.s32.totalorder %s18_s20, %s517_s23  ;;  %p523_p7 = scmp.lt.s32.totalorder %s517_s23, %s517_s23 }
  0x13   :  { %p524_p8 = por %p523_p7, %p522_p6 }
  0x15   :  { %p525_p9 = pnand %p524_p8, %p518_p5 }
  0x17   :  { %528 = shalt.err (!%p525_p9)
}
  0x18   :  { %20 = dma.hbm_to_vmem [thread:$0]  %s616_s0, 32, %s18_s20, [#allocation3]  }
  0x19   :  { %s537_s26 = scalar_lea.vmem %s39_s22, 1024  ;;  %p542_p11 = scmp.lt.s32.totalorder %s39_s22, %s39_s22 }
  0x1a   :  { %p538_p10 = scmp.ne.s32.totalorder %s39_s22, %s537_s26  ;;  %p543_p12 = scmp.lt.s32.totalorder %s537_s26, %s537_s26 }
  0x1c   :  { %p544_p13 = por %p543_p12, %p542_p11 }
  0x1e   :  { %p545_p0 = pnand %p544_p13, %p538_p10 }
  0x20   :  { %548 = shalt.err (!%p545_p0)
}
  0x21   :  { %44 = dma.hbm_to_vmem [thread:$0]  %s618_s2, 1024, %s39_s22, [#allocation6], %s576_s15, %s576_s15, %s577_s16  }
  0x22   :  { %569 = dma.done.wait [#allocation3], 32  }
  0x23   :  { %570 = vsyncadd [#allocation3], 4294967264 }
  0x24   :  { %571 = dma.done.wait [#allocation6], 3072  }
  0x25   :  { %572 = vsyncadd [#allocation6], 4294964224  ;;  %v463_v0 = vld [vmem:[#allocation5 + $0x78] sm:$0xff]   ;;  %v465_v2 = vld [vmem:[#allocation5 + $0x70] sm:$0xff]   ;;  %v580_v6 = vmov 1966171168   ;;  %v100_v8 = vlaneseq }
  0x26   :  { %v464_v1 = vld [vmem:[#allocation5 + $0x38] sm:$0xff]   ;;  %403 = vmatprep.subr.bf16.mxu0 %v463_v0  ;;  %v466_v3 = vld [vmem:[#allocation5 + $0x30] sm:$0xff]   ;;  %v467_v4 = vld [vmem:[#allocation5 + $0x68] sm:$0xff]   ;;  %v98_v7 = vunpack.c.l.s4 %v580_v6  ;;  %v581_v27 = vmov 0.0   ;;  %vm250_vm0 = vcmask 1041408   ;;  %vm582_vm1 = vmmov 0  }
  0x27   :  { %404 = vmatpush3.bf16.msra.mxu0 %v464_v1  ;;  %v468_v5 = vld [vmem:[#allocation5 + $0x28] sm:$0xff]   ;;  %v469_v9 = vld [vmem:[#allocation5 + $0x60] sm:$0xff]   ;;  %v101_v12 = vshrl.u32 %v100_v8, 7  ;;  %v471_v13 = vld [vmem:[#allocation5 + $0x58] sm:$0xff]   ;;  %434 = vmatprep.subr.bf16.mxu1 %v581_v27  ;;  %s583_s0 = smov [#allocation8]  }
  0x28   :  { %405 = vmatprep.subr.bf16.mxu0 %v465_v2  ;;  %v470_v10 = vld [vmem:[#allocation5 + $0x20] sm:$0xff]   ;;  %v99_v11 = vunpack.c.0.s8 %v98_v7  ;;  %v472_v14 = vld [vmem:[#allocation5 + $0x18] sm:$0xff]   ;;  %v473_v15 = vld [vmem:[#allocation5 + $0x50] sm:$0xff]   ;;  %450 = vmatprep.mubr.msk.bf16.mxu1 %vm582_vm1, %v581_v27  ;;  %s368_s2 = sshll.u32 %s583_s0, 4  ;;  %s369_s2 = int_to_ptr.vmem [resolvable:$true] %s368_s2 }
  0x29   :  { %v378_v17 = vld.sshfl [vmem:[#allocation2] sm:$0x11 pattern:$0x75316420]  ;;  %v474_v18 = vld [vmem:[#allocation5 + $0x10] sm:$0xff]   ;;  %v475_v20 = vld [vmem:[#allocation5 + $0x48] sm:$0xff]   ;;  %p554_p2 = scmp.lt.s32.totalorder %s369_s2, %s369_s2 }
  0x2a   :  { %v102_v16 = vsub.s32 %v99_v11, %v101_v12  ;;  %v96_v19 = vcombine.high %v378_v17, %v378_v17  ;;  %v476_v22 = vld [vmem:[#allocation5 + $0x8] sm:$0xff]   ;;  %v477_v23 = vld [vmem:[#allocation5 + $0x40] sm:$0xff]   ;;  %v479_v26 = vld [vmem:[#allocation7 + $0x38] sm:$0xff]   ;;  %s549_s28 = scalar_lea.vmem %s369_s2, 32 }
  0x2b   :  { %406 = vmatpush3.bf16.msra.mxu0 %v466_v3  ;;  %v478_v24 = vld [vmem:[#allocation5] sm:$0xff]   ;;  %435 = vmatpush3.bf16.msra.mxu1 %v479_v26  ;;  %v480_v28 = vld [vmem:[#allocation7 + $0x30] sm:$0xff]   ;;  %v481_v29 = vld [vmem:[#allocation7 + $0x28] sm:$0xff]   ;;  %p550_p1 = scmp.ne.s32.totalorder %s369_s2, %s549_s28  ;;  %p555_p3 = scmp.lt.s32.totalorder %s549_s28, %s549_s28 }
  0x2c   :  { %407 = vmatprep.subr.bf16.mxu0 %v467_v4  ;;  %v110_v21 = vrot.slane %v96_v19, %v102_v16  ;;  %v103_v25 = vrot.slane %v378_v17, %v102_v16  ;;  %436 = vmatprep.subr.bf16.mxu1 %v581_v27  ;;  %v482_v37 = vld [vmem:[#allocation7 + $0x20] sm:$0xff]   ;;  %v483_v38 = vld [vmem:[#allocation7 + $0x18] sm:$0xff]   ;;  %v484_v39 = vld [vmem:[#allocation7 + $0x10] sm:$0xff]  }
  0x2d   :  { %v485_v40 = vld [vmem:[#allocation7 + $0x8] sm:$0xff]   ;;  %v486_v41 = vld [vmem:[#allocation7] sm:$0xff]   ;;  %p556_p4 = por %p555_p3, %p554_p2 }
  0x2e   :  { %241 = vmatprep.mubr.bf16.mxu0 %v110_v21 }
  0x2f   :  { %408 = vmatpush3.bf16.msra.mxu0 %v468_v5  ;;  %437 = vmatpush3.bf16.msra.mxu1 %v480_v28  ;;  %p557_p5 = pnand %p556_p4, %p550_p1 }
  0x30   :  { %409 = vmatprep.subr.bf16.mxu0 %v469_v9  ;;  %438 = vmatprep.subr.bf16.mxu1 %v581_v27 }
  0x33   :  { %410 = vmatpush3.bf16.msra.mxu0 %v470_v10  ;;  %439 = vmatpush3.bf16.msra.mxu1 %v481_v29 }
  0x34   :  { %411 = vmatprep.subr.bf16.mxu0 %v471_v13  ;;  %440 = vmatprep.subr.bf16.mxu1 %v581_v27 }
  0x37   :  { %412 = vmatpush3.bf16.msra.mxu0 %v472_v14  ;;  %441 = vmatpush3.bf16.msra.mxu1 %v482_v37 }
  0x38   :  { %413 = vmatprep.subr.bf16.mxu0 %v473_v15  ;;  %442 = vmatprep.subr.bf16.mxu1 %v581_v27 }
  0x3b   :  { %414 = vmatpush3.bf16.msra.mxu0 %v474_v18  ;;  %443 = vmatpush3.bf16.msra.mxu1 %v483_v38 }
  0x3c   :  { %415 = vmatprep.subr.bf16.mxu0 %v475_v20  ;;  %444 = vmatprep.subr.bf16.mxu1 %v581_v27 }
  0x3f   :  { %416 = vmatpush3.bf16.msra.mxu0 %v476_v22  ;;  %445 = vmatpush3.bf16.msra.mxu1 %v484_v39 }
  0x40   :  { %417 = vmatprep.subr.bf16.mxu0 %v477_v23  ;;  %446 = vmatprep.subr.bf16.mxu1 %v581_v27 }
  0x43   :  { %418 = vmatpush3.bf16.msra.mxu0 %v478_v24  ;;  %447 = vmatpush3.bf16.msra.mxu1 %v485_v40 }
  0x44   :  { %448 = vmatprep.subr.bf16.mxu1 %v581_v27 }
  0x46   :  { %242 = vmatmul.mubr.bf16.vlgmr.msra.gmra.mxu0 %v103_v25 }
  0x47   :  { %449 = vmatpush3.bf16.msra.mxu1 %v486_v41 }
 0x106   :  { %v419_v30 = vpop.f32.mrf.mxu0 }
 0x108   :  { %v420_v31 = vpop.f32.mrf.mxu0 }
 0x109   :  { %v421_v32 = vadd.f32 %v420_v31, %v419_v30 }
 0x10a   :  { %v422_v33 = vpop.f32.mrf.mxu0 }
 0x10b   :  { %v249_v34 = vmul.f32 %v421_v32, %v421_v32 }
 0x10c   :  { %v423_v35 = vpop.f32.mrf.mxu0 }
 0x10d   :  { %v251_v36 = vsel %vm250_vm0, %v249_v34, 0.0 }
 0x10e   :  { %252 = vadd.xlane.f32.xlu0 %v251_v36 }
 0x197   :  { %v253_v42 = vpop.xlane.xlu0 %252 }
 0x198   :  { %487 = vrsqrt.f32 %v253_v42 }
 0x1a5   :  { %v488_v43 = vpop.eup %487 }
 0x1a6   :  { %v255_v44 = vmul.f32 %v488_v43, %v421_v32 }
 0x1a8   :  { %v256_v45 = vpack.c.bf16 %v255_v44, %v255_v44 }
 0x1aa   :  { %451 = vmatmul.mubr.bf16.vlgmr.msra.gmra.mxu1 %v256_v45 }
 0x26a   :  { %v355_v46 = vpop.f32.mrf.mxu1 }
 0x26b   :  { %361 = vst [vmem:[#allocation8] sm:$0x3] %v355_v46 }
 0x26c   :  { %v452_v47 = vpop.f32.mrf.mxu1 }
 0x26d   :  { %560 = shalt.err (!%p557_p5)
}
 0x26e   :  { %371 = dma.vmem_to_hbm [thread:$0]  %s369_s2, 32, %s619_s3, [#allocation4]   ;;  %v358_v48 = vpop.f32.mrf.mxu1 }
 0x270   :  { %v453_v49 = vpop.f32.mrf.mxu1 }
 0x271   :  { %573 = dma.done.wait [#allocation4], 32  }
 0x272   :  { %574 = vsyncadd [#allocation4], 4294967264 }
 0x273   :  { %375 = vsyncpa [#allocation3], 1 }
 0x274   :  { %376 = vsyncpa [#allocation6], 1 }
 0x275   :  { %377 = vsyncpa [#allocation4], 1 }

</bundles_post_ra>
